<compile_context>
chip_gen: v7x
topology: tpu7x:2x2x1
jax: 0.10.0
libtpu: 0.0.40
codegen_flags: <defaults>
</compile_context>

<pallas_src>
import functools

import jax
import jax.numpy as jnp
from jax.experimental import pallas as pl
from jax.experimental.pallas import tpu as pltpu

BN_EPS = 1e-5


# ---------------------------------------------------------------------------
# VMEM / tile sizing (generation-aware)
# ---------------------------------------------------------------------------
@functools.lru_cache(maxsize=1)
def _vmem_limits():
    """Returns (vmem_limit_bytes, tile_budget_bytes) for the local TPU."""
    try:
        cap = int(pltpu.get_tpu_info().vmem_capacity_bytes)
    except Exception:
        cap = 64 * 1024 * 1024          # conservative fallback (v7x-sized VMEM)
    vmem_limit = min(cap * 3 // 4, 96 * 1024 * 1024)   # leave headroom
    tile_budget = vmem_limit // 2                      # double-buffered tiles
    return vmem_limit, tile_budget


def _round_up(x, m):
    return (x + m - 1) // m * m


def _pick_tiles(n, cin, cout, hwp, budget_bytes, dtype_bytes):
    """Pick (nb, thw): images per block and lane-tile width, sized by bytes.

    Per grid step the pipeline holds double-buffered x blocks (nb*Cin*thw) and
    output blocks (nb*Cout*thw).  Choose the largest multiple of 128 dividing
    hwp that fits the budget; if the whole (padded) spatial extent fits, grow
    nb over whole images (divisor of n) to amortize per-step grid overhead.
    """
    per_lane = 2 * (cin + cout) * dtype_bytes          # double-buffered bytes/lane
    max_lanes = max(budget_bytes // per_lane, 128)

    thw = 128
    t = 256
    while t <= min(hwp, max_lanes):
        if hwp % t == 0:
            thw = t
        t += 128

    nb = 1
    if thw == hwp:
        for d in range(1, n + 1):
            if n % d == 0 and d * thw <= max_lanes:
                nb = d
    return nb, thw


# ---------------------------------------------------------------------------
# Kernels
# ---------------------------------------------------------------------------
def _fused_kernel(x_ref, w_ref, gamma_ref, beta_ref, o_ref, y_ref, *, inv_m, eps):
    """Small-problem path: conv + exact batch stats + normalize + ReLU in VMEM.

    x_ref: (N, Cin, HW)  w_ref: (Cout, Cin)  gamma/beta: (1, Cout, 1)
    o_ref: (N, Cout, HW) y_ref: VMEM scratch (N, Cout, HW) float32
    """
    n = x_ref.shape[0]
    cout = w_ref.shape[0]
    inv_m = jnp.float32(inv_m)

    def mean_body(b, s):
        y = jnp.dot(w_ref[...], x_ref[b], preferred_element_type=jnp.float32)
        y_ref[b] = y
        return s + jnp.sum(y, axis=1, keepdims=True)

    mean = jax.lax.fori_loop(
        0, n, mean_body, jnp.zeros((cout, 1), jnp.float32)) * inv_m

    def var_body(b, v):
        c = y_ref[b] - mean
        return v + jnp.sum(c * c, axis=1, keepdims=True)

    var = jax.lax.fori_loop(
        0, n, var_body, jnp.zeros((cout, 1), jnp.float32)) * inv_m

    scale = gamma_ref[0] * jax.lax.rsqrt(var + jnp.float32(eps))
    shift = beta_ref[0] - mean * scale

    @pl.loop(0, n)
    def _write(b):
        o_ref[b] = jnp.maximum(y_ref[b] * scale + shift, 0.0).astype(o_ref.dtype)


def _stats_kernel(x_ref, w_ref, sum_ref, sumsq_ref):
    """Tiled pass 1: per-channel sum / sum-of-squares of y = W @ x.

    x_ref: (nb, Cin, thw); w_ref: (Cout, Cin); accumulators (1, Cout, 1),
    resident across the hw ('arbitrary') grid axis, one per n-block so the n
    axis can be 'parallel' (megacore / v7x dual-TC safe).
    Padded pixels give y = 0 and contribute nothing, so stats stay exact.
    """
    nb = x_ref.shape[0]
    cout = w_ref.shape[0]

    @pl.when(pl.program_id(1) == 0)
    def _init():
        sum_ref[...] = jnp.zeros_like(sum_ref)
        sumsq_ref[...] = jnp.zeros_like(sumsq_ref)

    def body(b, carry):
        s, q = carry
        y = jnp.dot(w_ref[...], x_ref[b], preferred_element_type=jnp.float32)
        return (s + jnp.sum(y, axis=1, keepdims=True),
                q + jnp.sum(y * y, axis=1, keepdims=True))

    zero = jnp.zeros((cout, 1), jnp.float32)
    s, q = jax.lax.fori_loop(0, nb, body, (zero, zero))
    sum_ref[...] += s[None]
    sumsq_ref[...] += q[None]


def _apply_kernel(x_ref, w_ref, shift_ref, o_ref):
    """Tiled pass 2: y = W_scaled @ x; out = relu(y + shift).

    BN scale is pre-folded into the weights, so only one add + relu remains.
    x_ref: (nb, Cin, thw); w_ref: (Cout, Cin); shift_ref: (1, Cout, 1);
    o_ref: (nb, Cout, thw) -> lane-dense, unmasked stores.
    """
    nb = x_ref.shape[0]

    @pl.loop(0, nb)
    def _per_image(b):
        y = jnp.dot(w_ref[...], x_ref[b], preferred_element_type=jnp.float32)
        o_ref[b] = jnp.maximum(y + shift_ref[0], 0.0).astype(o_ref.dtype)


# ---------------------------------------------------------------------------
# Wrapper
# ---------------------------------------------------------------------------
def conv_bn_relu(x_nchw, conv_w, conv_b, bn_gamma, bn_beta, *,
                 force_tiled=False, tile_budget_bytes=None):
    """Forward pass of the PyTorch module (bn=True, use_bias=True, use_relu=True).

    x_nchw: (N, Cin, H, W); conv_w: (Cout, Cin, 1, 1); conv_b/bn_*: (Cout,).
    conv_b is accepted for API parity but unused: a constant per-channel bias
    cancels exactly under training-mode (batch-statistics) BatchNorm.
    """
    del conv_b
    N, Cin, H, W = x_nchw.shape
    Cout = conv_w.shape[0]
    HW = H * W
    M = N * HW                                     # true pixel count for BN stats
    dtype_bytes = jnp.dtype(x_nchw.dtype).itemsize

    # NCHW -> (N, Cin, H*W): free, contiguous reshape (no transpose anywhere).
    x3 = x_nchw.reshape(N, Cin, HW)
    w2d = conv_w.reshape(Cout, Cin)

    vmem_limit, tile_budget = _vmem_limits()
    if tile_budget_bytes is not None:
        tile_budget = int(tile_budget_bytes)

    # ---- small-problem fast path: one fused kernel, x read from HBM once ----
    fast_bytes = (N * HW * (Cin * dtype_bytes + Cout * (4 + dtype_bytes))
                  + 2 * Cout * Cin * 4)
    if not force_tiled and fast_bytes <= tile_budget:
        vmem = pl.BlockSpec(memory_space=pltpu.MemorySpace.VMEM)
        out3 = pl.pallas_call(
            functools.partial(_fused_kernel, inv_m=1.0 / M, eps=BN_EPS),
            out_shape=jax.ShapeDtypeStruct((N, Cout, HW), x_nchw.dtype),
            in_specs=[vmem, vmem, vmem, vmem],
            out_specs=vmem,
            scratch_shapes=[pltpu.VMEM((N, Cout, HW), jnp.float32)],
            compiler_params=pltpu.CompilerParams(vmem_limit_bytes=vmem_limit),
        )(x3, w2d, bn_gamma.reshape(1, Cout, 1), bn_beta.reshape(1, Cout, 1))
        return out3.reshape(N, Cout, H, W)

    # ---- tiled two-pass path ----
    # Pad H*W to a lane multiple so every tile is lane-dense (unmasked stores,
    # full double-buffering).  Padded pixels produce y = W @ 0 = 0 and the mean
    # still divides by the true M, so the statistics stay exact.
    HWp = _round_up(HW, 128)
    if HWp != HW:
        x3 = jnp.pad(x3, ((0, 0), (0, 0), (0, HWp - HW)))

    nb, thw = _pick_tiles(N, Cin, Cout, HWp, tile_budget, dtype_bytes)
    grid = (N // nb, HWp // thw)

    # Pass 1: per-channel sum / sum-of-squares, per-n-block accumulators.
    sums, sumsqs = pl.pallas_call(
        _stats_kernel,
        out_shape=(jax.ShapeDtypeStruct((N // nb, Cout, 1), jnp.float32),
                   jax.ShapeDtypeStruct((N // nb, Cout, 1), jnp.float32)),
        grid=grid,
        in_specs=[pl.BlockSpec((nb, Cin, thw), lambda i, j: (i, 0, j)),
                  pl.BlockSpec((Cout, Cin), lambda i, j: (0, 0))],
        out_specs=(pl.BlockSpec((1, Cout, 1), lambda i, j: (i, 0, 0)),
                   pl.BlockSpec((1, Cout, 1), lambda i, j: (i, 0, 0))),
        compiler_params=pltpu.CompilerParams(
            dimension_semantics=("parallel", "arbitrary"),
            vmem_limit_bytes=vmem_limit),
    )(x3, w2d)

    # Tiny per-channel epilogue in plain JAX.
    # NOTE: E[y^2] - E[y]^2 in f32 can lose precision for very large M with
    # |mean| >> std; a Welford/Chan combination of per-tile partials would fix
    # it at the cost of extra per-tile scalar work.
    inv_m = jnp.float32(1.0 / M)
    mean = jnp.sum(sums, axis=0) * inv_m                         # (Cout, 1)
    var = jnp.maximum(jnp.sum(sumsqs, axis=0) * inv_m - mean * mean, 0.0)
    scale = bn_gamma.reshape(Cout, 1) * jax.lax.rsqrt(var + BN_EPS)
    shift = (bn_beta.reshape(Cout, 1) - mean * scale).reshape(1, Cout, 1)
    w_scaled = w2d * scale                                       # fold BN scale into W

    # Pass 2: recompute y with scaled weights (cheaper than spilling y to HBM
    # for Cin <= Cout), add shift, ReLU; lane-dense (nb, Cout, thw) stores.
    out3 = pl.pallas_call(
        _apply_kernel,
        out_shape=jax.ShapeDtypeStruct((N, Cout, HWp), x_nchw.dtype),
        grid=grid,
        in_specs=[pl.BlockSpec((nb, Cin, thw), lambda i, j: (i, 0, j)),
                  pl.BlockSpec((Cout, Cin), lambda i, j: (0, 0)),
                  pl.BlockSpec((1, Cout, 1), lambda i, j: (0, 0, 0))],
        out_specs=pl.BlockSpec((nb, Cout, thw), lambda i, j: (i, 0, j)),
        compiler_params=pltpu.CompilerParams(
            dimension_semantics=("parallel", "parallel"),
            vmem_limit_bytes=vmem_limit),
    )(x3, w_scaled, shift)

    if HWp != HW:
        out3 = out3[:, :, :HW]
    return out3.reshape(N, Cout, H, W)


# ---------------------------------------------------------------------------
# Pure-JAX reference mirroring the PyTorch forward (training-mode BN)
# ---------------------------------------------------------------------------
def _reference(x_nchw, conv_w, conv_b, bn_gamma, bn_beta):
    N, Cin, H, W = x_nchw.shape
    Cout = conv_w.shape[0]
    x2d = jnp.transpose(x_nchw, (0, 2, 3, 1)).reshape(-1, Cin)
    y = x2d @ conv_w.reshape(Cout, Cin).T + conv_b
    mean = jnp.mean(y, axis=0, keepdims=True)
    var = jnp.mean((y - mean) ** 2, axis=0, keepdims=True)
    y = (y - mean) / jnp.sqrt(var + BN_EPS) * bn_gamma + bn_beta
    y = jnp.maximum(y, 0.0)
    return jnp.transpose(y.reshape(N, H, W, Cout), (0, 3, 1, 2))


if __name__ == "__main__":
    # Small shapes consistent with the module: batch=2, in_channels=4,
    # out_channels=8, spatial=16x16.
    N, Cin, Cout, H, W = 2, 4, 8, 16, 16

    key = jax.random.PRNGKey(0)
    kx, kw, kb = jax.random.split(key, 3)
    x = jax.random.normal(kx, (N, Cin, H, W), dtype=jnp.float32)
    conv_w = 0.1 * jax.random.normal(kw, (Cout, Cin, 1, 1), dtype=jnp.float32)
    conv_b = 0.1 * jax.random.normal(kb, (Cout,), dtype=jnp.float32)
    # PyTorch BatchNorm2d default init: weight (gamma) = 1, bias (beta) = 0.
    bn_gamma = jnp.ones((Cout,), dtype=jnp.float32)
    bn_beta = jnp.zeros((Cout,), dtype=jnp.float32)

    ref = _reference(x, conv_w, conv_b, bn_gamma, bn_beta)

    # 1) Fused single-kernel fast path (what these small shapes actually take).
    out = jax.block_until_ready(conv_bn_relu(x, conv_w, conv_b, bn_gamma, bn_beta))
    assert out.shape == (N, Cout, H, W)
    assert jnp.allclose(out, ref, atol=1e-4, rtol=1e-4), "fused path mismatch"

    # 2) Tiled two-pass path with the default byte budget
    #    (nb=2 images/block, thw=full spatial -> grid (1, 1)).
    out_t = jax.block_until_ready(
        conv_bn_relu(x, conv_w, conv_b, bn_gamma, bn_beta, force_tiled=True))
    assert jnp.allclose(out_t, ref, atol=1e-4, rtol=1e-4), "tiled path mismatch"

    # 3) Tiled path with a tiny forced tile budget (nb=1, thw=128, grid (2, 2))
    #    to exercise the cross-tile accumulator and the parallel n axis.
    out_s = jax.block_until_ready(
        conv_bn_relu(x, conv_w, conv_b, bn_gamma, bn_beta, force_tiled=True,
                     tile_budget_bytes=16 * 1024))
    assert jnp.allclose(out_s, ref, atol=1e-4, rtol=1e-4), "small-tile mismatch"

    print("KERNEL_OK")
</pallas_src>

<mosaic_0001>
module attributes {stable_mosaic.version = 11 : i64} {
  func.func @_fused_kernel(%arg0: memref<2x4x256xf32, #tpu.memory_space<vmem>>, %arg1: memref<8x4xf32, #tpu.memory_space<vmem>>, %arg2: memref<1x8x1xf32, #tpu.memory_space<vmem>>, %arg3: memref<1x8x1xf32, #tpu.memory_space<vmem>>, %arg4: memref<2x8x256xf32, #tpu.memory_space<vmem>>, %arg5: memref<2x8x256xf32, #tpu.memory_space<vmem>>) attributes {dimension_semantics = [], scalar_prefetch = 0 : i64, scratch_operands = 1 : i64, tpu.core_type = #tpu.core_type<tc>} {
    %cst = arith.constant 0.000000e+00 : f32
    %0 = vector.broadcast %cst : f32 to vector<8x1xf32>
    %c0_i32 = arith.constant 0 : i32
    %c2_i32 = arith.constant 2 : i32
    %1 = arith.addi %c0_i32, %c2_i32 : i32
    %c1_i32 = arith.constant 1 : i32
    %2 = scf.for %arg6 = %c0_i32 to %1 step %c1_i32 iter_args(%arg7 = %0) -> (vector<8x1xf32>)  : i32 {
      %c0_18 = arith.constant 0 : index
      %c0_19 = arith.constant 0 : index
      %21 = vector.load %arg1[%c0_18, %c0_19] : memref<8x4xf32, #tpu.memory_space<vmem>>, vector<8x4xf32>
      %22 = arith.index_cast %arg6 : i32 to index
      %c0_20 = arith.constant 0 : index
      %c0_21 = arith.constant 0 : index
      %23 = vector.load %arg0[%22, %c0_20, %c0_21] : memref<2x4x256xf32, #tpu.memory_space<vmem>>, vector<1x4x256xf32>
      %24 = vector.shape_cast %23 : vector<1x4x256xf32> to vector<4x256xf32>
      %cst_22 = arith.constant dense<0.000000e+00> : vector<8x256xf32>
      %25 = tpu.matmul %21, %24, %cst_22 {dimension_numbers = #tpu.dot_dimension_numbers<[1], [0], [0], [1], [0, 0, 1, 1], [], []>} : vector<8x4xf32>, vector<4x256xf32>, vector<8x256xf32> -> vector<8x256xf32>
      %26 = arith.index_cast %arg6 : i32 to index
      %c0_23 = arith.constant 0 : index
      %c0_24 = arith.constant 0 : index
      %27 = vector.load %arg5[%26, %c0_23, %c0_24] : memref<2x8x256xf32, #tpu.memory_space<vmem>>, vector<1x8x256xf32>
      %28 = vector.shape_cast %27 : vector<1x8x256xf32> to vector<8x256xf32>
      %29 = vector.shape_cast %25 : vector<8x256xf32> to vector<1x8x256xf32>
      tpu.vector_store %arg5[%26, %c0_23, %c0_24], %29 {strides = array<i32>} : memref<2x8x256xf32, #tpu.memory_space<vmem>>, vector<1x8x256xf32>,
      %cst_25 = arith.constant dense<0.000000e+00> : vector<8xf32>
      %30 = vector.multi_reduction <add>, %25, %cst_25 [1] : vector<8x256xf32> to vector<8xf32>
      %31 = vector.shape_cast %30 : vector<8xf32> to vector<8x1xf32>
      %32 = arith.addf %arg7, %31 : vector<8x1xf32>
      scf.yield %32 : vector<8x1xf32>
    }
    %c2_i32_0 = arith.constant 2 : i32
    %cst_1 = arith.constant 0.001953125 : f32
    %3 = vector.broadcast %cst_1 : f32 to vector<8x1xf32>
    %4 = arith.mulf %2, %3 : vector<8x1xf32>
    %cst_2 = arith.constant 0.000000e+00 : f32
    %5 = vector.broadcast %cst_2 : f32 to vector<8x1xf32>
    %c0_i32_3 = arith.constant 0 : i32
    %c2_i32_4 = arith.constant 2 : i32
    %6 = arith.addi %c0_i32_3, %c2_i32_4 : i32
    %c1_i32_5 = arith.constant 1 : i32
    %7 = scf.for %arg6 = %c0_i32_3 to %6 step %c1_i32_5 iter_args(%arg7 = %5) -> (vector<8x1xf32>)  : i32 {
      %21 = arith.index_cast %arg6 : i32 to index
      %c0_18 = arith.constant 0 : index
      %c0_19 = arith.constant 0 : index
      %22 = vector.load %arg5[%21, %c0_18, %c0_19] : memref<2x8x256xf32, #tpu.memory_space<vmem>>, vector<1x8x256xf32>
      %23 = vector.shape_cast %22 : vector<1x8x256xf32> to vector<8x256xf32>
      %24 = vector.broadcast %4 : vector<8x1xf32> to vector<8x256xf32>
      %25 = arith.subf %23, %24 : vector<8x256xf32>
      %26 = arith.mulf %25, %25 : vector<8x256xf32>
      %cst_20 = arith.constant dense<0.000000e+00> : vector<8xf32>
      %27 = vector.multi_reduction <add>, %26, %cst_20 [1] : vector<8x256xf32> to vector<8xf32>
      %28 = vector.shape_cast %27 : vector<8xf32> to vector<8x1xf32>
      %29 = arith.addf %arg7, %28 : vector<8x1xf32>
      scf.yield %29 : vector<8x1xf32>
    }
    %c2_i32_6 = arith.constant 2 : i32
    %cst_7 = arith.constant 0.001953125 : f32
    %8 = vector.broadcast %cst_7 : f32 to vector<8x1xf32>
    %9 = arith.mulf %7, %8 : vector<8x1xf32>
    %c0 = arith.constant 0 : index
    %c0_8 = arith.constant 0 : index
    %c0_9 = arith.constant 0 : index
    %10 = vector.load %arg2[%c0, %c0_8, %c0_9] : memref<1x8x1xf32, #tpu.memory_space<vmem>>, vector<1x8x1xf32>
    %11 = vector.shape_cast %10 : vector<1x8x1xf32> to vector<8x1xf32>
    %cst_10 = arith.constant 9.99999974E-6 : f32
    %12 = vector.broadcast %cst_10 : f32 to vector<8x1xf32>
    %13 = arith.addf %9, %12 : vector<8x1xf32>
    %14 = math.rsqrt %13 : vector<8x1xf32>
    %15 = arith.mulf %11, %14 : vector<8x1xf32>
    %c0_11 = arith.constant 0 : index
    %c0_12 = arith.constant 0 : index
    %c0_13 = arith.constant 0 : index
    %16 = vector.load %arg3[%c0_11, %c0_12, %c0_13] : memref<1x8x1xf32, #tpu.memory_space<vmem>>, vector<1x8x1xf32>
    %17 = vector.shape_cast %16 : vector<1x8x1xf32> to vector<8x1xf32>
    %18 = arith.mulf %4, %15 : vector<8x1xf32>
    %19 = arith.subf %17, %18 : vector<8x1xf32>
    %c0_i32_14 = arith.constant 0 : i32
    %c2_i32_15 = arith.constant 2 : i32
    %20 = arith.addi %c0_i32_14, %c2_i32_15 : i32
    %c1_i32_16 = arith.constant 1 : i32
    scf.for %arg6 = %c0_i32_14 to %20 step %c1_i32_16  : i32 {
      %c1_i32_18 = arith.constant 1 : i32
      %21 = arith.muli %arg6, %c1_i32_18 : i32
      %c0_i32_19 = arith.constant 0 : i32
      %22 = arith.addi %c0_i32_19, %21 : i32
      %23 = arith.index_cast %22 : i32 to index
      %c0_20 = arith.constant 0 : index
      %c0_21 = arith.constant 0 : index
      %24 = vector.load %arg5[%23, %c0_20, %c0_21] : memref<2x8x256xf32, #tpu.memory_space<vmem>>, vector<1x8x256xf32>
      %25 = vector.shape_cast %24 : vector<1x8x256xf32> to vector<8x256xf32>
      %26 = vector.broadcast %15 : vector<8x1xf32> to vector<8x256xf32>
      %27 = arith.mulf %25, %26 : vector<8x256xf32>
      %28 = vector.broadcast %19 : vector<8x1xf32> to vector<8x256xf32>
      %29 = arith.addf %27, %28 : vector<8x256xf32>
      %cst_22 = arith.constant 0.000000e+00 : f32
      %30 = vector.broadcast %cst_22 : f32 to vector<8x256xf32>
      %31 = arith.maximumf %29, %30 : vector<8x256xf32>
      %32 = arith.index_cast %22 : i32 to index
      %c0_23 = arith.constant 0 : index
      %c0_24 = arith.constant 0 : index
      %33 = vector.load %arg4[%32, %c0_23, %c0_24] : memref<2x8x256xf32, #tpu.memory_space<vmem>>, vector<1x8x256xf32>
      %34 = vector.shape_cast %33 : vector<1x8x256xf32> to vector<8x256xf32>
      %35 = vector.shape_cast %31 : vector<8x256xf32> to vector<1x8x256xf32>
      tpu.vector_store %arg4[%32, %c0_23, %c0_24], %35 {strides = array<i32>} : memref<2x8x256xf32, #tpu.memory_space<vmem>>, vector<1x8x256xf32>,
    }
    %c2_i32_17 = arith.constant 2 : i32
    return
  }
}

</mosaic_0001>

<bundles_post_ra>
// kernel: tpu_custom_call.1
= control target key start
LH: loop header
LB: loop body
LE: loop exit
PB: predicated region body
PF: predicated region fallthrough
CT: control target
= control target key end

     0   :  { %9 = vsyncpa [#allocation4], 0  ;;  %v336_v0 = vmov 0.0   ;;  %s386_s15 = smov 0   ;;  %s415_s0 = inlined_call_operand.vmem [shape: f32[2,4,256], index: 0, kind: input, shape index: {}]   ;;  %s416_s1 = inlined_call_operand.vmem [shape: f32[8,4], index: 1, kind: input, shape index: {}]   ;;  %s417_s2 = inlined_call_operand.vmem [shape: f32[1,8,1], index: 2, kind: input, shape index: {}]   ;;  %s418_s3 = inlined_call_operand.vmem [shape: f32[1,8,1], index: 3, kind: input, shape index: {}]   ;;  %s419_s4 = inlined_call_operand.hbm [shape: f32[2,8,256], index: 4, kind: output, shape index: {}]  }
   0x1 LB: > { %v356_v1 = vmov 0.0   ;;  %s238_s16 = sshll.u32 %s342_s15, 3  ;;  %vm36_vm0 = vcmask 1043456   ;;  %v25_v4 = vld [vmem:[%s416_s1] sm:$0xff]  ;;  %vm32_vm1 = vcmask 31744   ;;  %s239_s22 = sshll.u32 %s342_s15, 4  ;;  %s342_s15 = sphi %s386_s15, %s23_s15   ;;  %v338_v0 = vphi %v336_v0, %v337_v0  }
   0x2   : > { %105 = vmatprep.mubr.f32.mxu0 %v356_v1  ;;  %s28_s19 = scalar_lea.vmem %s415_s0, %s238_s16  ;;  %s113_s23 = scalar_lea.vmem [#allocation2], %s239_s22 }
   0x3   : > { %v29_v2 = vld [vmem:[%s28_s19] sm:$0xff]  ;;  %s23_s15 = sadd.s32 1, %s342_s15  }
   0x4   : > { %v31_v3 = vcombine.high %v29_v2, %v29_v2  ;;  %p20_p0 = scmp.ge.s32.totalorder %s23_s15, 2  }
   0x5   :  { %v344_v11 = vmov (%p20_p0), 0.0   ;;  %s348_s24 = smov (%p20_p0), 0  }
   0x6   : > { %229 = vmatprep.subr.msk.mxu0 %vm36_vm0, %v31_v3 }
   0x7   : > { %230 = vmatpush1.msk.msra.mxu0 %vm36_vm0, %v29_v2 }
   0x8   : > { %231 = vmatmul.mubr.msk.f32.vlgmr.msra.gmra.mrb[0].mxu0 %vm32_vm1, %v25_v4 }
  0xdb   : > { %v107_v5 = vpop.f32.mrb[0].mxu0 }
  0xdc   : > { %v109_v6 = vpop.f32.mrb[1].mxu0  ;;  %114 = vst [vmem:[%s113_s23] sm:$0xff] %v107_v5 }
  0xdd   : > { %115 = vst [vmem:[%s113_s23 + $0x8] sm:$0xff] %v109_v6  ;;  %v116_v7 = vadd.f32 %v109_v6, %v107_v5 }
  0xdf   : > { %117 = vadd.xlane.f32.xlu0 %v116_v7 }
 0x169   :  { %22 = sbr.rel (!%p20_p0) target bundleno = 1 (0x1), region = 62 }
 0x16c   : > { %v118_v8 = vpop.xlane.xlu0 %117 }
 0x16d   : > { %v119_v9 = vadd.f32 %v338_v0, %v118_v8  }
 0x16f   : > { %v337_v0 = vmov %v119_v9   ;;  %v120_v10 = vmul.f32 (%p20_p0), 0.001953125, %v119_v9 }
 0x170 LB: > { %s240_s25 = sshll.u32 %s350_s24, 4  ;;  %s126_s24 = sadd.s32 1, %s350_s24   ;;  %s350_s24 = sphi %s348_s24, %s126_s24   ;;  %v346_v11 = vphi %v344_v11, %v345_v11  }
 0x171   : > { %s130_s26 = scalar_lea.vmem [#allocation2], %s240_s25  ;;  %p123_p1 = scmp.ge.s32.totalorder %s126_s24, 2  }
 0x172   : > { %v131_v12 = vld [vmem:[%s130_s26] sm:$0xff]  ;;  %v132_v13 = vld [vmem:[%s130_s26 + $0x8] sm:$0xff]  ;;  %s352_s29 = smov (%p123_p1), 0  }
 0x173   : > { %v133_v14 = vsub.f32 %v131_v12, %v120_v10  ;;  %v134_v15 = vsub.f32 %v132_v13, %v120_v10  ;;  %v142_v23 = vld [vmem:[%s417_s2] sm:$0xff] (%p123_p1) }
 0x174   :  { %v146_v26 = vld [vmem:[%s418_s3] sm:$0xff] (%p123_p1) }
 0x175   : > { %v135_v16 = vmul.f32 %v133_v14, %v133_v14  ;;  %v136_v17 = vmul.f32 %v134_v15, %v134_v15 }
 0x177   : > { %v137_v18 = vadd.f32 %v136_v17, %v135_v16 }
 0x179   : > { %138 = vadd.xlane.f32.xlu0 %v137_v18 }
 0x203   :  { %125 = sbr.rel (!%p123_p1) target bundleno = 368 (0x170), region = 73 }
 0x206   : > { %v139_v19 = vpop.xlane.xlu0 %138 }
 0x207   : > { %v140_v20 = vadd.f32 %v346_v11, %v139_v19  }
 0x209   : > { %v345_v11 = vmov %v140_v20   ;;  %v141_v21 = vmul.f32 (%p123_p1), 0.001953125, %v140_v20 }
 0x20b   :  { %v143_v22 = vadd.f32 1e-05, %v141_v21 }
 0x20d   :  { %289 = vrsqrt.f32 %v143_v22 }
 0x217   :  { %v290_v24 = vpop.eup %289 }
 0x218   :  { %v145_v25 = vmul.f32 %v290_v24, %v142_v23 }
 0x21a   :  { %v147_v27 = vmul.f32 %v145_v25, %v120_v10 }
 0x21c   :  { %v148_v28 = vsub.f32 %v146_v26, %v147_v27 }
 0x21d LB: > { %v357_v29 = vmov 0   ;;  %s241_s30 = sshll.u32 %s354_s29, 4  ;;  %s154_s29 = sadd.s32 1, %s354_s29   ;;  %s354_s29 = sphi %s352_s29, %s154_s29  }
 0x21e   : > { %291 = vset.pattern.permute.xlu0 %v357_v29  ;;  %s157_s5 = scalar_lea.vmem [#allocation2], %s241_s30  ;;  %s177_s2 = scalar_lea.vmem [#allocation3], %s241_s30 }
 0x21f   : > { %162 = vperm.xlu0 %291, %v145_v25   ;;  %v158_v31 = vld [vmem:[%s157_s5] sm:$0xff]  ;;  %v159_v32 = vld [vmem:[%s157_s5 + $0x8] sm:$0xff]  ;;  %p151_p2 = scmp.ge.s32.totalorder %s154_s29, 2  }
 0x220   :  { %s358_s3 = smov (%p151_p2), [#allocation3]  }
 0x221   :  { %s185_s6 = sshll.u32 (%p151_p2), %s358_s3, 4  ;;  %s186_s6 = int_to_ptr.vmem [resolvable:$true] %s185_s6 }
 0x222   :  { %s292_s7 = scalar_lea.vmem (%p151_p2), %s186_s6, 512  ;;  %p297_p4 = scmp.lt.s32.totalorder (%p151_p2), %s186_s6, %s186_s6 }
 0x223   : > { %169 = vperm.xlu0 %291, %v148_v28   ;;  %p293_p3 = scmp.ne.s32.totalorder (%p151_p2), %s186_s6, %s292_s7  ;;  %p298_p5 = scmp.lt.s32.totalorder (%p151_p2), %s292_s7, %s292_s7 }
 0x225   :  { %p299_p6 = por (%p151_p2), %p298_p5, %p297_p4 }
 0x227   :  { %p300_p7 = pnand (%p151_p2), %p299_p6, %p293_p3 }
 0x29e   : > { %v163_v30 = vpop.permute.xlu0 %162 }
 0x29f   : > { %v165_v33 = vmul.f32 %v163_v30, %v158_v31  ;;  %v166_v34 = vmul.f32 %v163_v30, %v159_v32 }
 0x2a1   :  { %153 = sbr.rel (!%p151_p2) target bundleno = 541 (0x21d), region = 84 }
 0x2a2   : > { %v170_v35 = vpop.permute.xlu0 %169 }
 0x2a3   : > { %v172_v36 = vadd.f32 %v170_v35, %v165_v33  ;;  %v173_v37 = vadd.f32 %v170_v35, %v166_v34 }
 0x2a5   : > { %v174_v38 = vmax.f32 %v172_v36, 0.0  ;;  %v175_v39 = vmax.f32 %v173_v37, 0.0 }
 0x2a7   : > { %178 = vst [vmem:[%s177_s2] sm:$0xff] %v174_v38  ;;  %179 = vst [vmem:[%s177_s2 + $0x8] sm:$0xff] %v175_v39 }
 0x2a8   :  { %303 = shalt.err (!%p300_p7)
}
 0x2a9   :  { %s304_s10 = scalar_lea.hbm %s419_s4, 512 }
 0x2aa   :  { %p305_p8 = scmp.ne.s32.totalorder %s419_s4, %s304_s10  ;;  %p308_p9 = scmp.lt.u32.totalorder %s304_s10, %s419_s4 }
 0x2ac   :  { %p310_p10 = pnand %p308_p9, %p305_p8 }
 0x2ae   :  { %313 = shalt.err (!%p310_p10)
}
 0x2af   :  { %s359_s15 = smov 256   ;;  %s360_s16 = smov 16  }
 0x2b0   :  { %191 = dma.vmem_to_hbm [thread:$0]  %s186_s6, 512, %s419_s4, [#allocation4], %s359_s15, %s359_s15, %s360_s16  }
 0x2b1   :  { %334 = dma.done.wait [#allocation4], 512  }
 0x2b2   :  { %335 = vsyncadd [#allocation4], 4294966784 }
 0x2b3   :  { %195 = vsyncpa [#allocation4], 1 }

</bundles_post_ra>
